<compile_context>
chip_gen: v7x
topology: tpu7x:2x2x1
jax: 0.10.0
libtpu: 0.0.40
codegen_flags: <defaults>
</compile_context>

<pallas_src>
import jax
import jax.numpy as jnp
from jax import lax
from jax.experimental import pallas as pl
from jax.experimental.pallas import tpu as pltpu


def _round_up(x, m):
    return ((x + m - 1) // m) * m


def _pick_tile(dim, tile_max, unit):
    """Largest multiple of `unit` <= tile_max that divides `dim` (dim % unit == 0)."""
    t = min(tile_max, dim)
    t = (t // unit) * unit
    while t > unit and dim % t != 0:
        t -= unit
    return max(t, unit)


# ------------- y = (x @ v^T) * scale + b, K-reduction last grid axis --------

def _wn_matmul_kernel_acc(scale_ref, x_ref, v_ref, b_ref, o_ref, acc_ref):
    """Variant with f32 scratch accumulator (for non-f32 output dtypes)."""
    k = pl.program_id(2)

    @pl.when(k == 0)
    def _():
        acc_ref[...] = jnp.zeros_like(acc_ref)

    # Contract IN on both operands (no transpose of v), native-dtype MXU feed,
    # f32 accumulation.  (For bf16 inputs this is already the MXU-native path.)
    acc_ref[...] += lax.dot_general(
        x_ref[...], v_ref[...],
        dimension_numbers=(((1,), (1,)), ((), ())),
        preferred_element_type=jnp.float32)

    @pl.when(k == pl.num_programs(2) - 1)
    def _():
        # w = v * (g / ||v||) folded into a scalar epilogue rescale (scale is
        # a single SMEM word); bias tile is already f32.
        o_ref[...] = (acc_ref[...] * scale_ref[0] + b_ref[...]).astype(o_ref.dtype)


def _wn_matmul_kernel_f32(scale_ref, x_ref, v_ref, b_ref, o_ref):
    """Variant accumulating directly in the resident f32 output block."""
    k = pl.program_id(2)

    @pl.when(k == 0)
    def _():
        o_ref[...] = jnp.zeros_like(o_ref)

    o_ref[...] += lax.dot_general(
        x_ref[...], v_ref[...],
        dimension_numbers=(((1,), (1,)), ((), ())),
        preferred_element_type=jnp.float32)

    @pl.when(k == pl.num_programs(2) - 1)
    def _():
        o_ref[...] = o_ref[...] * scale_ref[0] + b_ref[...]


# --------------------------------- Wrapper ----------------------------------

def weightnorm_linear(x, g, v, b, *, tm_max=512, tn_max=512, tk_max=1024):
    """x: (B, IN), g: scalar, v: (OUT, IN), b: (OUT,) -> (B, OUT)."""
    B, IN = x.shape
    OUT, INv = v.shape
    assert IN == INv
    out_dtype = x.dtype

    # Scalar scale computed once in plain XLA (fuses with the pad copies) so
    # v is only streamed from HBM inside the matmul itself.
    v32 = v.astype(jnp.float32)
    scale = (jnp.asarray(g, jnp.float32)
             * lax.rsqrt(jnp.sum(v32 * v32))).reshape(1)

    # Pad only to hardware minimums (sublane packing on B; 128 lanes on
    # OUT/IN), then pick tiles that divide the padded dims exactly.
    sub = max(8, 32 // jnp.dtype(x.dtype).itemsize)     # 8 f32, 16 bf16, 32 int8
    Bp = _round_up(B, sub)
    OUTp = _round_up(OUT, 128)
    INp = _round_up(IN, 128)

    tm = _pick_tile(Bp, tm_max, sub)
    tn = _pick_tile(OUTp, tn_max, 128)
    tk = _pick_tile(INp, tk_max, 128)

    xp = jnp.pad(x, ((0, Bp - B), (0, INp - IN)))
    vp = jnp.pad(v, ((0, OUTp - OUT), (0, INp - IN)))
    bp = jnp.pad(b.astype(jnp.float32), (0, OUTp - OUT)).reshape(1, OUTp)

    f32_out = out_dtype == jnp.float32
    kernel = _wn_matmul_kernel_f32 if f32_out else _wn_matmul_kernel_acc
    scratch = [] if f32_out else [pltpu.VMEM((tm, tn), jnp.float32)]

    grid = (Bp // tm, OUTp // tn, INp // tk)

    # VMEM budget: double-buffered inputs/outputs (+ scratch) with headroom,
    # capped safely below v7x's 64 MiB physical per-TC VMEM.
    itx = jnp.dtype(x.dtype).itemsize
    itv = jnp.dtype(v.dtype).itemsize
    ito = jnp.dtype(out_dtype).itemsize
    est = (2 * (tm * tk * itx + tn * tk * itv + tn * 4)
           + 2 * tm * tn * ito
           + (0 if f32_out else tm * tn * 4))
    vmem_limit = int(min(max(2 * est, 32 * 1024 * 1024), 56 * 1024 * 1024))

    cost = pl.CostEstimate(
        flops=2 * Bp * OUTp * INp,
        transcendentals=0,
        bytes_accessed=(Bp * INp * itx + OUTp * INp * itv
                        + OUTp * 4 + Bp * OUTp * ito))

    yp = pl.pallas_call(
        kernel,
        out_shape=jax.ShapeDtypeStruct((Bp, OUTp), out_dtype),
        grid_spec=pltpu.PrefetchScalarGridSpec(
            num_scalar_prefetch=1,                                # scale -> SMEM
            grid=grid,
            in_specs=[
                pl.BlockSpec((tm, tk), lambda i, j, k, s: (i, k)),   # x tile
                pl.BlockSpec((tn, tk), lambda i, j, k, s: (j, k)),   # v tile
                pl.BlockSpec((1, tn), lambda i, j, k, s: (0, j)),    # bias tile
            ],
            out_specs=pl.BlockSpec((tm, tn), lambda i, j, k, s: (i, j)),
            scratch_shapes=scratch,
        ),
        compiler_params=pltpu.CompilerParams(
            dimension_semantics=("parallel", "parallel", "arbitrary"),
            vmem_limit_bytes=vmem_limit),
        cost_estimate=cost,
    )(scale, xp, vp, bp)

    return yp[:B, :OUT]


# ----------------------------------- Demo -----------------------------------

if __name__ == "__main__":
    key = jax.random.PRNGKey(0)
    k_w, k_b, k_x = jax.random.split(key, 3)

    batch, in_features, out_features = 8, 32, 16

    # Deterministic parameter init (mimicking nn.Linear's uniform init range).
    bound = 1.0 / jnp.sqrt(in_features)
    w0 = jax.random.uniform(k_w, (out_features, in_features),
                            minval=-bound, maxval=bound, dtype=jnp.float32)
    b = jax.random.uniform(k_b, (out_features,),
                           minval=-bound, maxval=bound, dtype=jnp.float32)

    # WeightNorm._reset(): g = ||w||_F, v = w / g
    g = jnp.sqrt(jnp.sum(w0 * w0))
    v = w0 / g

    x = jax.random.normal(k_x, (batch, in_features), dtype=jnp.float32)

    y = weightnorm_linear(x, g, v, b)
    y = jax.block_until_ready(y)

    # Reference check (plain JAX) of the exact WeightNorm forward semantics.
    w_ref = v * (g / jnp.sqrt(jnp.sum(v * v)))
    y_ref = x @ w_ref.T + b
    assert jnp.allclose(y, y_ref, atol=1e-5, rtol=1e-5), (
        float(jnp.max(jnp.abs(y - y_ref))))

    print("KERNEL_OK")
</pallas_src>

<mosaic_0001>
module attributes {stable_mosaic.version = 11 : i64} {
  func.func @_wn_matmul_kernel_f32(%arg0: i32, %arg1: i32, %arg2: i32, %arg3: memref<1xf32, #tpu.memory_space<smem>>, %arg4: memref<8x128xf32, #tpu.memory_space<vmem>>, %arg5: memref<128x128xf32, #tpu.memory_space<vmem>>, %arg6: memref<1x128xf32, #tpu.memory_space<vmem>>, %arg7: memref<8x128xf32, #tpu.memory_space<vmem>>) attributes {dimension_semantics = [#tpu.dimension_semantics<parallel>, #tpu.dimension_semantics<parallel>, #tpu.dimension_semantics<arbitrary>], iteration_bounds = array<i64: 1, 1, 1>, scalar_prefetch = 1 : i64, scratch_operands = 0 : i64, tpu.core_type = #tpu.core_type<tc>, window_params = [{transform_indices = @transform_0, window_bounds = array<i64: 8, 128>}, {transform_indices = @transform_1, window_bounds = array<i64: 128, 128>}, {transform_indices = @transform_2, window_bounds = array<i64: 1, 128>}, {transform_indices = @transform_3, window_bounds = array<i64: 8, 128>}]} {
    %c0_i32 = arith.constant 0 : i32
    %0 = arith.cmpi eq, %arg2, %c0_i32 : i32
    %1 = arith.extui %0 : i1 to i32
    %c0_i32_0 = arith.constant 0 : i32
    %2 = arith.cmpi ne, %1, %c0_i32_0 : i32
    scf.if %2 {
      %cst_10 = arith.constant 0.000000e+00 : f32
      %12 = vector.broadcast %cst_10 : f32 to vector<8x128xf32>
      %c0_11 = arith.constant 0 : index
      %c0_12 = arith.constant 0 : index
      %13 = vector.load %arg7[%c0_11, %c0_12] : memref<8x128xf32, #tpu.memory_space<vmem>>, vector<8x128xf32>
      tpu.vector_store %arg7[%c0_11, %c0_12], %12 {strides = array<i32>} : memref<8x128xf32, #tpu.memory_space<vmem>>, vector<8x128xf32>,
    } else {
    }
    %c0 = arith.constant 0 : index
    %c0_1 = arith.constant 0 : index
    %3 = vector.load %arg7[%c0, %c0_1] : memref<8x128xf32, #tpu.memory_space<vmem>>, vector<8x128xf32>
    %c0_2 = arith.constant 0 : index
    %c0_3 = arith.constant 0 : index
    %4 = vector.load %arg4[%c0_2, %c0_3] : memref<8x128xf32, #tpu.memory_space<vmem>>, vector<8x128xf32>
    %c0_4 = arith.constant 0 : index
    %c0_5 = arith.constant 0 : index
    %5 = vector.load %arg5[%c0_4, %c0_5] : memref<128x128xf32, #tpu.memory_space<vmem>>, vector<128x128xf32>
    %cst = arith.constant dense<0.000000e+00> : vector<8x128xf32>
    %6 = tpu.matmul %4, %5, %cst {dimension_numbers = #tpu.dot_dimension_numbers<[1], [1], [0], [0], [0, 0, 1, 0], [], []>} : vector<8x128xf32>, vector<128x128xf32>, vector<8x128xf32> -> vector<8x128xf32>
    %7 = arith.addf %3, %6 : vector<8x128xf32>
    %c0_6 = arith.constant 0 : index
    %c0_7 = arith.constant 0 : index
    %8 = vector.load %arg7[%c0_6, %c0_7] : memref<8x128xf32, #tpu.memory_space<vmem>>, vector<8x128xf32>
    tpu.vector_store %arg7[%c0_6, %c0_7], %7 {strides = array<i32>} : memref<8x128xf32, #tpu.memory_space<vmem>>, vector<8x128xf32>,
    %c0_i32_8 = arith.constant 0 : i32
    %9 = arith.cmpi eq, %arg2, %c0_i32_8 : i32
    %10 = arith.extui %9 : i1 to i32
    %c0_i32_9 = arith.constant 0 : i32
    %11 = arith.cmpi ne, %10, %c0_i32_9 : i32
    scf.if %11 {
      %c0_10 = arith.constant 0 : index
      %c0_11 = arith.constant 0 : index
      %12 = vector.load %arg7[%c0_10, %c0_11] : memref<8x128xf32, #tpu.memory_space<vmem>>, vector<8x128xf32>
      %c0_12 = arith.constant 0 : index
      %13 = memref.load %arg3[%c0_12] : memref<1xf32, #tpu.memory_space<smem>>
      %14 = vector.broadcast %13 : f32 to vector<8x128xf32>
      %15 = arith.mulf %12, %14 : vector<8x128xf32>
      %c0_13 = arith.constant 0 : index
      %c0_14 = arith.constant 0 : index
      %16 = vector.load %arg6[%c0_13, %c0_14] : memref<1x128xf32, #tpu.memory_space<vmem>>, vector<1x128xf32>
      %17 = vector.broadcast %16 : vector<1x128xf32> to vector<8x128xf32>
      %18 = arith.addf %15, %17 : vector<8x128xf32>
      %c0_15 = arith.constant 0 : index
      %c0_16 = arith.constant 0 : index
      %19 = vector.load %arg7[%c0_15, %c0_16] : memref<8x128xf32, #tpu.memory_space<vmem>>, vector<8x128xf32>
      tpu.vector_store %arg7[%c0_15, %c0_16], %18 {strides = array<i32>} : memref<8x128xf32, #tpu.memory_space<vmem>>, vector<8x128xf32>,
    } else {
    }
    return
  }
  func.func @transform_0(%arg0: i32, %arg1: i32, %arg2: i32, %arg3: memref<1xf32, #tpu.memory_space<smem>>) -> (i32, i32) {
    %c0_i32 = arith.constant 0 : i32
    return %arg0, %arg2 : i32, i32
  }
  func.func @transform_1(%arg0: i32, %arg1: i32, %arg2: i32, %arg3: memref<1xf32, #tpu.memory_space<smem>>) -> (i32, i32) {
    %c0_i32 = arith.constant 0 : i32
    return %arg1, %arg2 : i32, i32
  }
  func.func @transform_2(%arg0: i32, %arg1: i32, %arg2: i32, %arg3: memref<1xf32, #tpu.memory_space<smem>>) -> (i32, i32) {
    %c0_i32 = arith.constant 0 : i32
    %c0_i32_0 = arith.constant 0 : i32
    return %c0_i32, %arg1 : i32, i32
  }
  func.func @transform_3(%arg0: i32, %arg1: i32, %arg2: i32, %arg3: memref<1xf32, #tpu.memory_space<smem>>) -> (i32, i32) {
    %c0_i32 = arith.constant 0 : i32
    return %arg0, %arg1 : i32, i32
  }
}

</mosaic_0001>

<bundles_post_ra>
// kernel: tpu_custom_call.1
= control target key start
LH: loop header
LB: loop body
LE: loop exit
PB: predicated region body
PF: predicated region fallthrough
CT: control target
= control target key end

     0   :  { %10 = vsyncpa [#allocation5], 0  ;;  %s409_s0 = inlined_call_operand.<no memory space> [shape: f32[1], index: 0, kind: input, shape index: {}]   ;;  %s410_s1 = inlined_call_operand.hbm [shape: f32[8,128], index: 1, kind: input, shape index: {}]   ;;  %s411_s2 = inlined_call_operand.hbm [shape: f32[128,128], index: 2, kind: input, shape index: {}]   ;;  %s412_s3 = inlined_call_operand.vmem [shape: f32[1,128], index: 3, kind: input, shape index: {}]   ;;  %s413_s4 = inlined_call_operand.hbm [shape: f32[8,128], index: 4, kind: output, shape index: {}]  }
   0x1   :  { %11 = vsyncpa [#allocation8], 0 }
   0x2   :  { %12 = vsyncpa [#allocation6], 0  ;;  %s327_s15 = smov [#allocation4]   ;;  %s328_s17 = smov [#allocation7]  }
   0x3   :  { %s19_s16 = sshll.u32 %s327_s15, 4  ;;  %s28_s18 = sshll.u32 %s328_s17, 4  ;;  %s20_s16 = int_to_ptr.vmem [resolvable:$true] %s19_s16  ;;  %s360_s18 = int_to_ptr.vmem [resolvable:$true] %s28_s18 }
   0x4   :  { %s255_s21 = scalar_lea.hbm %s410_s1, 128 }
   0x5   :  { %p256_p0 = scmp.ne.s32.totalorder %s410_s1, %s255_s21  ;;  %p259_p1 = scmp.lt.u32.totalorder %s255_s21, %s410_s1 }
   0x7   :  { %p261_p2 = pnand %p259_p1, %p256_p0 }
   0x9   :  { %264 = shalt.err (!%p261_p2)
}
   0xa   :  { %s265_s26 = scalar_lea.vmem %s20_s16, 128  ;;  %p270_p4 = scmp.lt.s32.totalorder %s20_s16, %s20_s16 }
   0xb   :  { %p266_p3 = scmp.ne.s32.totalorder %s20_s16, %s265_s26  ;;  %p271_p5 = scmp.lt.s32.totalorder %s265_s26, %s265_s26 }
   0xd   :  { %p272_p6 = por %p271_p5, %p270_p4 }
   0xf   :  { %p273_p7 = pnand %p272_p6, %p266_p3 }
  0x11   :  { %276 = shalt.err (!%p273_p7)
}
  0x12   :  { %22 = dma.hbm_to_vmem [thread:$0]  %s410_s1, 128, %s20_s16, [#allocation5]  }
  0x13   :  { %s277_s5 = scalar_lea.hbm %s411_s2, 2048 }
  0x14   :  { %p278_p8 = scmp.ne.s32.totalorder %s411_s2, %s277_s5  ;;  %p281_p9 = scmp.lt.u32.totalorder %s277_s5, %s411_s2 }
  0x16   :  { %p283_p10 = pnand %p281_p9, %p278_p8 }
  0x18   :  { %286 = shalt.err (!%p283_p10)
}
  0x19   :  { %s287_s10 = scalar_lea.vmem %s360_s18, 2048  ;;  %p292_p12 = scmp.lt.s32.totalorder %s360_s18, %s360_s18 }
  0x1a   :  { %p288_p11 = scmp.ne.s32.totalorder %s360_s18, %s287_s10  ;;  %p293_p13 = scmp.lt.s32.totalorder %s287_s10, %s287_s10 }
  0x1c   :  { %p294_p0 = por %p293_p13, %p292_p12 }
  0x1e   :  { %p295_p1 = pnand %p294_p0, %p288_p11 }
  0x20   :  { %298 = shalt.err (!%p295_p1)
}
  0x21   :  { %s329_s1 = smov 128   ;;  %s330_s11 = smov 8  }
  0x22   :  { %34 = dma.hbm_to_vmem [thread:$0]  %s411_s2, 2048, %s360_s18, [#allocation8], %s329_s1, %s329_s1, %s330_s11  }
  0x23   :  { %321 = dma.done.wait [#allocation5], 128  }
  0x24   :  { %322 = vsyncadd [#allocation5], 4294967168 }
  0x25   :  { %323 = dma.done.wait [#allocation8], 2048  }
  0x26   :  { %324 = vsyncadd [#allocation8], 4294965248  ;;  %v331_v0 = vmov 0.0|0.0   ;;  %vm332_vm0 = vmmov 0   ;;  %v333_v1 = vmov 0.0   ;;  %v50_v2 = vld [vmem:[#allocation7] sm:$0xff]  ;;  %v143_v28 = vstv %s409_s0 }
  0x27   :  { %223 = vmatprep.subr.bf16.mxu0 %v331_v0  ;;  %220 = vmatprep.mubr.msk.f32.mxu0 %vm332_vm0, %v333_v1  ;;  %v51_v3 = vld [vmem:[#allocation7 + $0x8] sm:$0xff]  ;;  %v52_v5 = vld [vmem:[#allocation7 + $0x10] sm:$0xff]  ;;  %v53_v6 = vld [vmem:[#allocation7 + $0x18] sm:$0xff]  ;;  %s334_s17 = smov [#allocation9]  }
  0x28   :  { %v224_v4 = vpack.c.bf16 %v51_v3, %v50_v2  ;;  %v227_v7 = vpack.c.bf16 %v53_v6, %v52_v5  ;;  %v54_v8 = vld [vmem:[#allocation7 + $0x20] sm:$0xff]  ;;  %v55_v9 = vld [vmem:[#allocation7 + $0x28] sm:$0xff]  ;;  %v56_v11 = vld [vmem:[#allocation7 + $0x30] sm:$0xff]  ;;  %s160_s18 = sshll.u32 %s334_s17, 4  ;;  %s161_s18 = int_to_ptr.vmem [resolvable:$true] %s160_s18 }
  0x29   :  { %v230_v10 = vpack.c.bf16 %v55_v9, %v54_v8  ;;  %v57_v12 = vld [vmem:[#allocation7 + $0x38] sm:$0xff]  ;;  %v58_v14 = vld [vmem:[#allocation7 + $0x40] sm:$0xff]  ;;  %v59_v15 = vld [vmem:[#allocation7 + $0x48] sm:$0xff]  ;;  %s299_s19 = scalar_lea.vmem %s161_s18, 128  ;;  %p304_p3 = scmp.lt.s32.totalorder %s161_s18, %s161_s18 }
  0x2a   :  { %225 = vmatpush3.bf16.xpose.msra.mxu0 %v224_v4  ;;  %v233_v13 = vpack.c.bf16 %v57_v12, %v56_v11  ;;  %v236_v16 = vpack.c.bf16 %v59_v15, %v58_v14  ;;  %v60_v17 = vld [vmem:[#allocation7 + $0x50] sm:$0xff]  ;;  %v61_v18 = vld [vmem:[#allocation7 + $0x58] sm:$0xff]  ;;  %v62_v20 = vld [vmem:[#allocation7 + $0x60] sm:$0xff]  ;;  %p300_p2 = scmp.ne.s32.totalorder %s161_s18, %s299_s19  ;;  %p305_p4 = scmp.lt.s32.totalorder %s299_s19, %s299_s19 }
  0x2b   :  { %226 = vmatprep.subr.bf16.mxu0 %v331_v0  ;;  %v239_v19 = vpack.c.bf16 %v61_v18, %v60_v17  ;;  %v63_v21 = vld [vmem:[#allocation7 + $0x68] sm:$0xff]  ;;  %v64_v23 = vld [vmem:[#allocation7 + $0x70] sm:$0xff]  ;;  %v65_v24 = vld [vmem:[#allocation7 + $0x78] sm:$0xff] }
  0x2c   :  { %v242_v22 = vpack.c.bf16 %v63_v21, %v62_v20  ;;  %v245_v25 = vpack.c.bf16 %v65_v24, %v64_v23  ;;  %v49_v26 = vld [vmem:[#allocation4] sm:$0xff]  ;;  %p306_p5 = por %p305_p4, %p304_p3 }
  0x2d   :  { %v170_v30 = vld [vmem:[%s412_s3] ss:$0 sm:$0xff] }
  0x2e   :  { %p307_p6 = pnand %p306_p5, %p300_p2 }
  0x32   :  { %228 = vmatpush3.bf16.xpose.msra.mxu0 %v227_v7 }
  0x33   :  { %229 = vmatprep.subr.bf16.mxu0 %v331_v0 }
  0x3a   :  { %231 = vmatpush3.bf16.xpose.msra.mxu0 %v230_v10 }
  0x3b   :  { %232 = vmatprep.subr.bf16.mxu0 %v331_v0 }
  0x42   :  { %234 = vmatpush3.bf16.xpose.msra.mxu0 %v233_v13 }
  0x43   :  { %235 = vmatprep.subr.bf16.mxu0 %v331_v0 }
  0x4a   :  { %237 = vmatpush3.bf16.xpose.msra.mxu0 %v236_v16 }
  0x4b   :  { %238 = vmatprep.subr.bf16.mxu0 %v331_v0 }
  0x52   :  { %240 = vmatpush3.bf16.xpose.msra.mxu0 %v239_v19 }
  0x53   :  { %241 = vmatprep.subr.bf16.mxu0 %v331_v0 }
  0x5a   :  { %243 = vmatpush3.bf16.xpose.msra.mxu0 %v242_v22 }
  0x5b   :  { %244 = vmatprep.subr.bf16.mxu0 %v331_v0 }
  0x62   :  { %246 = vmatpush3.bf16.xpose.msra.mxu0 %v245_v25 }
  0x69   :  { %221 = vmatmul.mubr.f32.vlgmr.msra.gmra.mrb[0].mxu0 %v49_v26 }
 0x13c   :  { %v132_v27 = vpop.f32.mrb[0].mxu0 }
 0x13d   :  { %v222_v29 = vpop.f32.mrb[1].mxu0  ;;  %v144_v31 = vmul.f32 %v143_v28, %v132_v27 }
 0x13f   :  { %v152_v32 = vadd.f32 %v170_v30, %v144_v31 }
 0x141   :  { %153 = vst [vmem:[#allocation9] sm:$0xff] %v152_v32 }
 0x142   :  { %310 = shalt.err (!%p307_p6)
}
 0x143   :  { %s311_s21 = scalar_lea.hbm %s413_s4, 128 }
 0x144   :  { %p312_p7 = scmp.ne.s32.totalorder %s413_s4, %s311_s21  ;;  %p315_p8 = scmp.lt.u32.totalorder %s311_s21, %s413_s4 }
 0x146   :  { %p317_p9 = pnand %p315_p8, %p312_p7 }
 0x148   :  { %320 = shalt.err (!%p317_p9)
}
 0x149   :  { %163 = dma.vmem_to_hbm [thread:$0]  %s161_s18, 128, %s413_s4, [#allocation6]  }
 0x14a   :  { %325 = dma.done.wait [#allocation6], 128  }
 0x14b   :  { %326 = vsyncadd [#allocation6], 4294967168 }
 0x14c   :  { %167 = vsyncpa [#allocation5], 1 }
 0x14d   :  { %168 = vsyncpa [#allocation8], 1 }
 0x14e   :  { %169 = vsyncpa [#allocation6], 1 }

</bundles_post_ra>
